<compile_context>
chip_gen: v5e
topology: v5e:2x2
jax: 0.10.0
libtpu: 0.0.40
codegen_flags: <defaults>
</compile_context>

<pallas_src>
import functools

import jax
import jax.numpy as jnp
from jax.experimental import pallas as pl
from jax.experimental.pallas import tpu as pltpu


def _sepconv_kernel(x_ref, w_ref, o_ref, xpad_ref, *, k, dil, pad_beg, H):
    """Processes B images per grid step.

    x_ref   : (B, H,  W*Cin)     unpadded input, (W, Cin) folded onto lanes (bf16)
    w_ref   : (k, W*Cin, W*Cout) banded fused depthwise+pointwise weight (bf16)
    o_ref   : (B, H,  W*Cout)    lane-dense output slab (f32)
    xpad_ref: (B, Hp, W*Cin)     VMEM scratch holding the H-padded slab (bf16)
    """
    B, Hp, WC = xpad_ref.shape
    pad_end = Hp - H - pad_beg

    # In-kernel 'same' padding along H (the W halo is baked into the band
    # weight).  Halo rows are re-zeroed every step so the kernel stays correct
    # regardless of how grid steps are sharded across cores.
    if pad_beg > 0:
        xpad_ref[:, :pad_beg, :] = jnp.zeros((B, pad_beg, WC), xpad_ref.dtype)
    if pad_end > 0:
        xpad_ref[:, pad_beg + H:, :] = jnp.zeros((B, pad_end, WC), xpad_ref.dtype)
    xpad_ref[:, pad_beg:pad_beg + H, :] = x_ref[...]

    # k MXU dots per image (bf16 x bf16 -> f32 acc), accumulation in registers,
    # single full-lane (W*Cout = 128) store per image.
    for b in range(B):                        # static unroll over per-step batch
        acc = None
        for dy in range(k):                   # static unroll over the k row taps
            rows = xpad_ref[b, dy * dil:dy * dil + H, :]          # (H, W*Cin)
            part = jnp.dot(rows, w_ref[dy],
                           preferred_element_type=jnp.float32)    # (H, W*Cout)
            acc = part if acc is None else acc + part
        o_ref[b] = acc.astype(o_ref.dtype)


def separable_conv2d_same(x_nchw, dw, pw, *, kernel_size=3, stride=1, dilation=1):
    """Pallas TPU forward of SeparableConv2d_same (bias=False, stride=1).

    x_nchw: (N, Cin, H, W) f32
    dw:     (Cin, 1, k, k)    depthwise weight (PyTorch layout, groups=Cin)
    pw:     (Cout, Cin, 1, 1) pointwise weight (PyTorch layout)
    returns (N, Cout, H, W) f32
    """
    assert stride == 1, "only stride=1 is implemented"
    N, Cin, H, W = x_nchw.shape
    Cout = pw.shape[0]
    k, dil = kernel_size, dilation
    assert dw.shape == (Cin, 1, k, k) and pw.shape == (Cout, Cin, 1, 1)

    # fixed_padding geometry (same math as the PyTorch helper).
    k_eff = k + (k - 1) * (dil - 1)
    pad_total = k_eff - 1
    pb = pad_total // 2
    Hp = H + pad_total

    # Per-step batch: amortize fixed per-grid-step overhead.
    B = min(N, 8)
    while N % B:
        B -= 1
    num_steps = N // B

    # --- wrapper-side layout plumbing (no pad: padding is fused in-kernel) ---
    # NCHW -> NHWC, fold (W, Cin) onto the lane axis, cast to bf16 (MXU-native).
    x_fold = (jnp.transpose(x_nchw, (0, 2, 3, 1))
              .reshape(N, H, W * Cin)
              .astype(jnp.bfloat16))

    # --- fuse depthwise + pointwise, build banded weight over the UNPADDED W ---
    # w_eff[dy, dx, ci, co] = dw[ci, 0, dy, dx] * pw[co, ci]
    w_eff = jnp.einsum('cij,oc->ijco', dw[:, 0].astype(jnp.float32),
                       pw[:, :, 0, 0].astype(jnp.float32))        # (k,k,Cin,Cout)
    # bigw[dy, w_in*Cin + c, w*Cout + o] = w_eff[dy, dx, c, o]
    #   where w_in = w + dx*dil - pb (the W 'same'-padding is baked into the band).
    diff = jnp.arange(W)[:, None] - jnp.arange(W)[None, :] + pb   # (W_in, W_out)
    valid = (diff >= 0) & (diff < k * dil) & (diff % dil == 0)
    dx = jnp.clip(diff // dil, 0, k - 1)
    g = w_eff[:, dx] * valid[None, :, :, None, None]              # (k,W,W,Cin,Cout)
    bigw = (jnp.transpose(g, (0, 1, 3, 2, 4))
            .reshape(k, W * Cin, W * Cout)
            .astype(jnp.bfloat16))

    # Useful fused MACs (band zeros excluded), not the dense banded matmul flops.
    flops = 2 * N * H * W * k * k * Cin * Cout
    bytes_accessed = 2 * x_fold.size + 2 * bigw.size + 4 * N * H * W * Cout

    out_fold = pl.pallas_call(
        functools.partial(_sepconv_kernel, k=k, dil=dil, pad_beg=pb, H=H),
        out_shape=jax.ShapeDtypeStruct((N, H, W * Cout), jnp.float32),
        grid=(num_steps,),
        in_specs=[
            pl.BlockSpec((B, H, W * Cin), lambda n: (n, 0, 0)),
            pl.BlockSpec((k, W * Cin, W * Cout), lambda n: (0, 0, 0)),
        ],
        out_specs=pl.BlockSpec((B, H, W * Cout), lambda n: (n, 0, 0)),
        scratch_shapes=[pltpu.VMEM((B, Hp, W * Cin), jnp.bfloat16)],
        compiler_params=pltpu.CompilerParams(
            dimension_semantics=("parallel",),
            vmem_limit_bytes=32 * 1024 * 1024),
        cost_estimate=pl.CostEstimate(flops=flops, transcendentals=0,
                                      bytes_accessed=bytes_accessed),
    )(x_fold, bigw)

    out = out_fold.reshape(N, H, W, Cout)          # unfold lanes back to (W, C)
    return jnp.transpose(out, (0, 3, 1, 2))        # NHWC -> NCHW


# ----------------- pure-JAX reference (for verification) -----------------
def separable_conv2d_same_ref(x_nchw, dw, pw, *, kernel_size=3, dilation=1):
    cin = x_nchw.shape[1]
    k_eff = kernel_size + (kernel_size - 1) * (dilation - 1)
    pad_total = k_eff - 1
    pb, pe = pad_total // 2, pad_total - pad_total // 2
    y = jax.lax.conv_general_dilated(
        x_nchw, dw, window_strides=(1, 1), padding=((pb, pe), (pb, pe)),
        rhs_dilation=(dilation, dilation),
        dimension_numbers=('NCHW', 'OIHW', 'NCHW'),
        feature_group_count=cin)
    z = jax.lax.conv_general_dilated(
        y, pw, window_strides=(1, 1), padding='VALID',
        dimension_numbers=('NCHW', 'OIHW', 'NCHW'))
    return z


if __name__ == "__main__":
    N, Cin, Cout, H, W = 2, 4, 8, 16, 16

    key = jax.random.PRNGKey(0)
    kx, kd, kp = jax.random.split(key, 3)
    x = jax.random.normal(kx, (N, Cin, H, W), jnp.float32)
    # PyTorch-layout weights: depthwise (Cin,1,3,3), pointwise (Cout,Cin,1,1).
    dw = jax.random.normal(kd, (Cin, 1, 3, 3), jnp.float32) / 3.0
    pw = jax.random.normal(kp, (Cout, Cin, 1, 1), jnp.float32) / (Cin ** 0.5)

    out = jax.block_until_ready(separable_conv2d_same(x, dw, pw))
    ref = jax.block_until_ready(separable_conv2d_same_ref(x, dw, pw))

    assert out.shape == (N, Cout, H, W), out.shape
    # bf16 operands with f32 accumulation: ~1e-2 expected worst-case abs error.
    max_err = float(jnp.max(jnp.abs(out - ref)))
    assert max_err < 5e-2, f"mismatch vs reference: max abs err = {max_err}"
    print("KERNEL_OK")
</pallas_src>

<mosaic_0001>
module attributes {stable_mosaic.version = 11 : i64} {
  func.func @_sepconv_kernel(%arg0: i32, %arg1: memref<2x16x64xbf16, #tpu.memory_space<vmem>>, %arg2: memref<3x64x128xbf16, #tpu.memory_space<vmem>>, %arg3: memref<2x16x128xf32, #tpu.memory_space<vmem>>, %arg4: memref<2x18x64xbf16, #tpu.memory_space<vmem>>) attributes {dimension_semantics = [#tpu.dimension_semantics<parallel>], iteration_bounds = array<i64: 1>, scalar_prefetch = 0 : i64, scratch_operands = 1 : i64, tpu.core_type = #tpu.core_type<tc>, window_params = [{transform_indices = @transform_0, window_bounds = array<i64: 2, 16, 64>}, {pipeline_mode = #tpu.pipeline_mode<synchronous>, transform_indices = @transform_1, window_bounds = array<i64: 3, 64, 128>}, {transform_indices = @transform_2, window_bounds = array<i64: 2, 16, 128>}]} {
    %cst = arith.constant 0.000000e+00 : bf16
    %0 = vector.broadcast %cst : bf16 to vector<2x1x64xbf16>
    %c0 = arith.constant 0 : index
    %c0_0 = arith.constant 0 : index
    %c0_1 = arith.constant 0 : index
    %1 = vector.load %arg4[%c0, %c0_0, %c0_1] : memref<2x18x64xbf16, #tpu.memory_space<vmem>>, vector<2x1x64xbf16>
    tpu.vector_store %arg4[%c0, %c0_0, %c0_1], %0 {strides = array<i32>} : memref<2x18x64xbf16, #tpu.memory_space<vmem>>, vector<2x1x64xbf16>,
    %cst_2 = arith.constant 0.000000e+00 : bf16
    %2 = vector.broadcast %cst_2 : bf16 to vector<2x1x64xbf16>
    %c0_3 = arith.constant 0 : index
    %c17 = arith.constant 17 : index
    %c0_4 = arith.constant 0 : index
    %3 = vector.load %arg4[%c0_3, %c17, %c0_4] : memref<2x18x64xbf16, #tpu.memory_space<vmem>>, vector<2x1x64xbf16>
    tpu.vector_store %arg4[%c0_3, %c17, %c0_4], %2 {strides = array<i32>} : memref<2x18x64xbf16, #tpu.memory_space<vmem>>, vector<2x1x64xbf16>,
    %c0_5 = arith.constant 0 : index
    %c0_6 = arith.constant 0 : index
    %c0_7 = arith.constant 0 : index
    %4 = vector.load %arg1[%c0_5, %c0_6, %c0_7] : memref<2x16x64xbf16, #tpu.memory_space<vmem>>, vector<2x16x64xbf16>
    %c0_8 = arith.constant 0 : index
    %c1 = arith.constant 1 : index
    %c0_9 = arith.constant 0 : index
    %5 = vector.load %arg4[%c0_8, %c1, %c0_9] : memref<2x18x64xbf16, #tpu.memory_space<vmem>>, vector<2x16x64xbf16>
    tpu.vector_store %arg4[%c0_8, %c1, %c0_9], %4 {strides = array<i32>} : memref<2x18x64xbf16, #tpu.memory_space<vmem>>, vector<2x16x64xbf16>,
    %c0_10 = arith.constant 0 : index
    %c0_11 = arith.constant 0 : index
    %c0_12 = arith.constant 0 : index
    %6 = vector.load %arg4[%c0_10, %c0_11, %c0_12] : memref<2x18x64xbf16, #tpu.memory_space<vmem>>, vector<1x16x64xbf16>
    %7 = vector.shape_cast %6 : vector<1x16x64xbf16> to vector<16x64xbf16>
    %c0_13 = arith.constant 0 : index
    %c0_14 = arith.constant 0 : index
    %c0_15 = arith.constant 0 : index
    %8 = vector.load %arg2[%c0_13, %c0_14, %c0_15] : memref<3x64x128xbf16, #tpu.memory_space<vmem>>, vector<1x64x128xbf16>
    %9 = vector.shape_cast %8 : vector<1x64x128xbf16> to vector<64x128xbf16>
    %cst_16 = arith.constant dense<0.000000e+00> : vector<16x128xf32>
    %10 = tpu.matmul %7, %9, %cst_16 {dimension_numbers = #tpu.dot_dimension_numbers<[1], [0], [0], [1], [0, 0, 1, 1], [], []>} : vector<16x64xbf16>, vector<64x128xbf16>, vector<16x128xf32> -> vector<16x128xf32>
    %c0_17 = arith.constant 0 : index
    %c1_18 = arith.constant 1 : index
    %c0_19 = arith.constant 0 : index
    %11 = vector.load %arg4[%c0_17, %c1_18, %c0_19] : memref<2x18x64xbf16, #tpu.memory_space<vmem>>, vector<1x16x64xbf16>
    %12 = vector.shape_cast %11 : vector<1x16x64xbf16> to vector<16x64xbf16>
    %c1_20 = arith.constant 1 : index
    %c0_21 = arith.constant 0 : index
    %c0_22 = arith.constant 0 : index
    %13 = vector.load %arg2[%c1_20, %c0_21, %c0_22] : memref<3x64x128xbf16, #tpu.memory_space<vmem>>, vector<1x64x128xbf16>
    %14 = vector.shape_cast %13 : vector<1x64x128xbf16> to vector<64x128xbf16>
    %cst_23 = arith.constant dense<0.000000e+00> : vector<16x128xf32>
    %15 = tpu.matmul %12, %14, %cst_23 {dimension_numbers = #tpu.dot_dimension_numbers<[1], [0], [0], [1], [0, 0, 1, 1], [], []>} : vector<16x64xbf16>, vector<64x128xbf16>, vector<16x128xf32> -> vector<16x128xf32>
    %16 = arith.addf %10, %15 : vector<16x128xf32>
    %c0_24 = arith.constant 0 : index
    %c2 = arith.constant 2 : index
    %c0_25 = arith.constant 0 : index
    %17 = vector.load %arg4[%c0_24, %c2, %c0_25] : memref<2x18x64xbf16, #tpu.memory_space<vmem>>, vector<1x16x64xbf16>
    %18 = vector.shape_cast %17 : vector<1x16x64xbf16> to vector<16x64xbf16>
    %c2_26 = arith.constant 2 : index
    %c0_27 = arith.constant 0 : index
    %c0_28 = arith.constant 0 : index
    %19 = vector.load %arg2[%c2_26, %c0_27, %c0_28] : memref<3x64x128xbf16, #tpu.memory_space<vmem>>, vector<1x64x128xbf16>
    %20 = vector.shape_cast %19 : vector<1x64x128xbf16> to vector<64x128xbf16>
    %cst_29 = arith.constant dense<0.000000e+00> : vector<16x128xf32>
    %21 = tpu.matmul %18, %20, %cst_29 {dimension_numbers = #tpu.dot_dimension_numbers<[1], [0], [0], [1], [0, 0, 1, 1], [], []>} : vector<16x64xbf16>, vector<64x128xbf16>, vector<16x128xf32> -> vector<16x128xf32>
    %22 = arith.addf %16, %21 : vector<16x128xf32>
    %c0_30 = arith.constant 0 : index
    %c0_31 = arith.constant 0 : index
    %c0_32 = arith.constant 0 : index
    %23 = vector.load %arg3[%c0_30, %c0_31, %c0_32] : memref<2x16x128xf32, #tpu.memory_space<vmem>>, vector<1x16x128xf32>
    %24 = vector.shape_cast %23 : vector<1x16x128xf32> to vector<16x128xf32>
    %25 = vector.shape_cast %22 : vector<16x128xf32> to vector<1x16x128xf32>
    tpu.vector_store %arg3[%c0_30, %c0_31, %c0_32], %25 {strides = array<i32>} : memref<2x16x128xf32, #tpu.memory_space<vmem>>, vector<1x16x128xf32>,
    %c1_33 = arith.constant 1 : index
    %c0_34 = arith.constant 0 : index
    %c0_35 = arith.constant 0 : index
    %26 = vector.load %arg4[%c1_33, %c0_34, %c0_35] : memref<2x18x64xbf16, #tpu.memory_space<vmem>>, vector<1x16x64xbf16>
    %27 = vector.shape_cast %26 : vector<1x16x64xbf16> to vector<16x64xbf16>
    %c0_36 = arith.constant 0 : index
    %c0_37 = arith.constant 0 : index
    %c0_38 = arith.constant 0 : index
    %28 = vector.load %arg2[%c0_36, %c0_37, %c0_38] : memref<3x64x128xbf16, #tpu.memory_space<vmem>>, vector<1x64x128xbf16>
    %29 = vector.shape_cast %28 : vector<1x64x128xbf16> to vector<64x128xbf16>
    %cst_39 = arith.constant dense<0.000000e+00> : vector<16x128xf32>
    %30 = tpu.matmul %27, %29, %cst_39 {dimension_numbers = #tpu.dot_dimension_numbers<[1], [0], [0], [1], [0, 0, 1, 1], [], []>} : vector<16x64xbf16>, vector<64x128xbf16>, vector<16x128xf32> -> vector<16x128xf32>
    %c1_40 = arith.constant 1 : index
    %c1_41 = arith.constant 1 : index
    %c0_42 = arith.constant 0 : index
    %31 = vector.load %arg4[%c1_40, %c1_41, %c0_42] : memref<2x18x64xbf16, #tpu.memory_space<vmem>>, vector<1x16x64xbf16>
    %32 = vector.shape_cast %31 : vector<1x16x64xbf16> to vector<16x64xbf16>
    %c1_43 = arith.constant 1 : index
    %c0_44 = arith.constant 0 : index
    %c0_45 = arith.constant 0 : index
    %33 = vector.load %arg2[%c1_43, %c0_44, %c0_45] : memref<3x64x128xbf16, #tpu.memory_space<vmem>>, vector<1x64x128xbf16>
    %34 = vector.shape_cast %33 : vector<1x64x128xbf16> to vector<64x128xbf16>
    %cst_46 = arith.constant dense<0.000000e+00> : vector<16x128xf32>
    %35 = tpu.matmul %32, %34, %cst_46 {dimension_numbers = #tpu.dot_dimension_numbers<[1], [0], [0], [1], [0, 0, 1, 1], [], []>} : vector<16x64xbf16>, vector<64x128xbf16>, vector<16x128xf32> -> vector<16x128xf32>
    %36 = arith.addf %30, %35 : vector<16x128xf32>
    %c1_47 = arith.constant 1 : index
    %c2_48 = arith.constant 2 : index
    %c0_49 = arith.constant 0 : index
    %37 = vector.load %arg4[%c1_47, %c2_48, %c0_49] : memref<2x18x64xbf16, #tpu.memory_space<vmem>>, vector<1x16x64xbf16>
    %38 = vector.shape_cast %37 : vector<1x16x64xbf16> to vector<16x64xbf16>
    %c2_50 = arith.constant 2 : index
    %c0_51 = arith.constant 0 : index
    %c0_52 = arith.constant 0 : index
    %39 = vector.load %arg2[%c2_50, %c0_51, %c0_52] : memref<3x64x128xbf16, #tpu.memory_space<vmem>>, vector<1x64x128xbf16>
    %40 = vector.shape_cast %39 : vector<1x64x128xbf16> to vector<64x128xbf16>
    %cst_53 = arith.constant dense<0.000000e+00> : vector<16x128xf32>
    %41 = tpu.matmul %38, %40, %cst_53 {dimension_numbers = #tpu.dot_dimension_numbers<[1], [0], [0], [1], [0, 0, 1, 1], [], []>} : vector<16x64xbf16>, vector<64x128xbf16>, vector<16x128xf32> -> vector<16x128xf32>
    %42 = arith.addf %36, %41 : vector<16x128xf32>
    %c1_54 = arith.constant 1 : index
    %c0_55 = arith.constant 0 : index
    %c0_56 = arith.constant 0 : index
    %43 = vector.load %arg3[%c1_54, %c0_55, %c0_56] : memref<2x16x128xf32, #tpu.memory_space<vmem>>, vector<1x16x128xf32>
    %44 = vector.shape_cast %43 : vector<1x16x128xf32> to vector<16x128xf32>
    %45 = vector.shape_cast %42 : vector<16x128xf32> to vector<1x16x128xf32>
    tpu.vector_store %arg3[%c1_54, %c0_55, %c0_56], %45 {strides = array<i32>} : memref<2x16x128xf32, #tpu.memory_space<vmem>>, vector<1x16x128xf32>,
    return
  }
  func.func @transform_0(%arg0: i32) -> (i32, i32, i32) {
    %c0_i32 = arith.constant 0 : i32
    %c0_i32_0 = arith.constant 0 : i32
    %c0_i32_1 = arith.constant 0 : i32
    return %arg0, %c0_i32, %c0_i32_0 : i32, i32, i32
  }
  func.func @transform_1(%arg0: i32) -> (i32, i32, i32) {
    %c0_i32 = arith.constant 0 : i32
    %c0_i32_0 = arith.constant 0 : i32
    %c0_i32_1 = arith.constant 0 : i32
    %c0_i32_2 = arith.constant 0 : i32
    return %c0_i32, %c0_i32_0, %c0_i32_1 : i32, i32, i32
  }
  func.func @transform_2(%arg0: i32) -> (i32, i32, i32) {
    %c0_i32 = arith.constant 0 : i32
    %c0_i32_0 = arith.constant 0 : i32
    %c0_i32_1 = arith.constant 0 : i32
    return %arg0, %c0_i32, %c0_i32_0 : i32, i32, i32
  }
}

</mosaic_0001>

<bundles_post_ra>
// kernel: tpu_custom_call.1
= control target key start
LH: loop header
LB: loop body
LE: loop exit
PB: predicated region body
PF: predicated region fallthrough
CT: control target
= control target key end

     0   :  { %7 = vsyncpa [#allocation4], 0  ;;  %s816_s0 = inlined_call_operand.hbm [shape: bf16[2,16,64], index: 0, kind: input, shape index: {}]   ;;  %s817_s1 = inlined_call_operand.hbm [shape: bf16[3,64,128], index: 1, kind: input, shape index: {}]   ;;  %s818_s2 = inlined_call_operand.hbm [shape: f32[2,16,128], index: 2, kind: output, shape index: {}]  }
   0x1   :  { %8 = vsyncpa [#allocation7], 0 }
   0x2   :  { %9 = vsyncpa [#allocation5], 0  ;;  %s14_s11 = sshll.u32 %s816_s0, 4  ;;  %s733_s12 = smov [#allocation3]   ;;  %s15_s11 = int_to_ptr.hbm [resolvable:$true] %s14_s11 }
   0x3   :  { %s16_s13 = sshll.u32 %s733_s12, 4  ;;  %s27_s16 = sshll.u32 %s817_s1, 4  ;;  %s17_s13 = int_to_ptr.vmem [resolvable:$true] %s16_s13  ;;  %s28_s16 = int_to_ptr.hbm [resolvable:$true] %s27_s16 }
   0x4   :  { %s734_s17 = smov 64   ;;  %s735_s18 = smov 4  }
   0x5   :  { %22 = dma.hbm_to_vmem [thread:$0]  %s15_s11, 256, %s17_s13, [#allocation4], %s734_s17, %s734_s17, %s735_s18  }
   0x6   :  { %s736_s19 = smov [#allocation6]  }
   0x7   :  { %s29_s20 = sshll.u32 %s736_s19, 4  ;;  %s30_s20 = int_to_ptr.vmem [resolvable:$true] %s29_s20 }
   0x8   :  { %35 = dma.hbm_to_vmem [thread:$0]  %s28_s16, 1536, %s30_s20, [#allocation7], %s734_s17, %s734_s17, %s735_s18  }
   0x9   :  { %727 = dma.done.wait [#allocation4], 256  }
   0xa   :  { %728 = vsyncadd [#allocation4], 4294967040 }
   0xb   :  { %729 = dma.done.wait [#allocation7], 1536  }
   0xc   :  { %730 = vsyncadd [#allocation7], 4294965760  ;;  %vm45_vm0 = vcmask 516096   ;;  %vm46_vm1 = vsmask.f32 256  ;;  %v617_v0 = vld [vmem:[#allocation6 + $0x18] sm:$0xff] }
   0xd   :  { %vm54_vm2 = vsmask.f32 7938  ;;  %v625_v1 = vld [vmem:[#allocation6 + $0x58] sm:$0xff]  ;;  %vm762_vm3 = vmand %vm45_vm0, %vm46_vm1  ;;  %238 = vmatpush.bf16.msra.mxu1 %v617_v0  ;;  %v616_v5 = vld [vmem:[#allocation6 + $0x10] sm:$0xff]  ;;  %vm66_vm5 = vsmask.f32 4368 }
   0xe   :  { %v621_v3 = vld [vmem:[#allocation6 + $0x38] sm:$0xff]  ;;  %vm767_vm4 = vmand %vm45_vm0, %vm54_vm2  ;;  %296 = vmatpush.bf16.msra.mxu2 %v625_v1  ;;  %v624_v6 = vld [vmem:[#allocation6 + $0x50] sm:$0xff]  ;;  %vm108_vm6 = vcmask 519168   ;;  %vm190_vm9 = vcmask 523264   ;;  %vm261_vm10 = vcmask 1046528   ;;  %s737_s0 = smov [#allocation8]  }
   0xf   :  { %v633_v7 = vld [vmem:[#allocation6 + $0x38] sm:$0xff]  ;;  %198 = vmatpush.bf16.msra.mxu0 %v621_v3  ;;  %v620_v8 = vld [vmem:[#allocation6 + $0x30] sm:$0xff]  ;;  %v615_v10 = vld [vmem:[#allocation6 + $0x8] sm:$0xff]  ;;  %vm153_vm11 = vsmask.f32 7424  ;;  %s496_s1 = sshll.u32 %s737_s0, 4  ;;  %s497_s1 = int_to_ptr.vmem [resolvable:$true] %s496_s1 }
  0x10   :  { %v632_v9 = vld [vmem:[#allocation6 + $0x30] sm:$0xff]  ;;  %381 = vmatpush.bf16.msra.mxu3 %v633_v7  ;;  %v623_v11 = vld [vmem:[#allocation6 + $0x48] sm:$0xff]  ;;  %v48_v12 = vld [vmem:[#allocation2] sm:$0x1]  ;;  %s498_s23 = sshll.u32 %s818_s2, 4  ;;  %s738_s24 = smov 128   ;;  %s499_s23 = int_to_ptr.hbm [resolvable:$true] %s498_s23 }
  0x11   :  { %v51_v13 = vld [vmem:[#allocation2 + $0xc] sm:$0x1]  ;;  %v56_v14 = vld [vmem:[#allocation2 + $0x8] sm:$0x1]  ;;  %v619_v15 = vld [vmem:[#allocation6 + $0x28] sm:$0xff]  ;;  %v49_v16 = vsel %vm762_vm3, 0, %v48_v12  ;;  %239 = vmatpush.bf16.msra.mxu1 %v616_v5 }
  0x12   :  { %v52_v17 = vsel %vm762_vm3, 0, %v51_v13  ;;  %v57_v18 = vsel %vm767_vm4, 0, %v56_v14  ;;  %v59_v19 = vld [vmem:[#allocation2 + $0x14] sm:$0x1]  ;;  %297 = vmatpush.bf16.msra.mxu2 %v624_v6  ;;  %50 = vst [vmem:[#allocation2] sm:$0x1] %v49_v16  ;;  %vm781_vm7 = vmand %vm108_vm6, %vm54_vm2 }
  0x13   :  { %v60_v20 = vsel %vm767_vm4, 0, %v59_v19  ;;  %v62_v21 = vld [vmem:[#allocation3] sm:$0xf]  ;;  %v631_v22 = vld [vmem:[#allocation6 + $0x28] sm:$0xff]  ;;  %199 = vmatpush.bf16.msra.mxu0 %v620_v8  ;;  %53 = vst [vmem:[#allocation2 + $0xc] sm:$0x1] %v52_v17  ;;  %vm787_vm8 = vmor %vm46_vm1, %vm66_vm5 }
  0x14   :  { %v63_v23 = vld [vmem:[#allocation3 + $0x4] sm:$0xf]  ;;  %v64_v24 = vld [vmem:[#allocation3 + $0x8] sm:$0xf]  ;;  %382 = vmatpush.bf16.msra.mxu3 %v632_v9  ;;  %58 = vst [vmem:[#allocation2 + $0x8] sm:$0x1] %v57_v18 }
  0x15   :  { %v65_v25 = vld [vmem:[#allocation3 + $0xc] sm:$0xf]  ;;  %v69_v26 = vshrl.u32 %v62_v21, 16  ;;  %v72_v27 = vshll.u32 %v62_v21, 16  ;;  %61 = vst [vmem:[#allocation2 + $0x14] sm:$0x1] %v60_v20  ;;  %240 = vmatpush.bf16.msra.mxu1 %v615_v10 }
  0x16   :  { %v77_v28 = vshrl.u32 %v63_v23, 16  ;;  %v80_v29 = vshll.u32 %v63_v23, 16  ;;  %v86_v30 = vshrl.u32 %v64_v24, 16  ;;  %v89_v31 = vshll.u32 %v64_v24, 16  ;;  %v614_v32 = vld [vmem:[#allocation6] sm:$0xff]  ;;  %298 = vmatpush.bf16.msra.mxu2 %v623_v11  ;;  %v637_v39 = vld [vmem:[#allocation6 + $0x58] sm:$0xff] }
  0x17   :  { %v71_v33 = vrot.slane %v69_v26, 7  ;;  %v94_v34 = vshrl.u32 %v65_v25, 16  ;;  %v97_v35 = vshll.u32 %v65_v25, 16  ;;  %v622_v36 = vld [vmem:[#allocation6 + $0x40] sm:$0xff]  ;;  %200 = vmatpush.bf16.msra.mxu0 %v619_v15  ;;  %v629_v46 = vld [vmem:[#allocation6 + $0x18] sm:$0xff]  ;;  %v636_v60 = vld [vmem:[#allocation6 + $0x50] sm:$0xff] }
  0x18   :  { %v79_v37 = vrot.slane %v77_v28, 7  ;;  %v88_v38 = vrot.slane %v86_v30, 7  ;;  %v618_v40 = vld [vmem:[#allocation6 + $0x20] sm:$0xff]  ;;  %383 = vmatpush.bf16.msra.mxu3 %v631_v22  ;;  %v628_v0 = vld [vmem:[#allocation6 + $0x10] sm:$0xff]  ;;  %v635_v3 = vld [vmem:[#allocation6 + $0x48] sm:$0xff]  ;;  %s739_s25 = smov 8  }
  0x19   :  { %v74_v41 = vor.u32 %v72_v27, %v71_v33  ;;  %v75_v42 = vrot.slane %v71_v33, 4  ;;  %v96_v43 = vrot.slane %v94_v34, 7  ;;  %v630_v45 = vld [vmem:[#allocation6 + $0x20] sm:$0xff]  ;;  %v110_v52 = vld [vmem:[#allocation2] sm:$0xf]  ;;  %241 = vmatpush.bf16.msra.mxu1 %v614_v32  ;;  %v627_v4 = vld [vmem:[#allocation6 + $0x8] sm:$0xff] }
  0x1a   :  { %v82_v48 = vor.u32 %v80_v29, %v79_v37  ;;  %v84_v49 = vrot.slane %v79_v37, 4  ;;  %v91_v50 = vor.u32 %v89_v31, %v88_v38  ;;  %v92_v51 = vrot.slane %v88_v38, 4  ;;  %v118_v56 = vld [vmem:[#allocation2 + $0xc] sm:$0xf]  ;;  %299 = vmatpush.bf16.msra.mxu2 %v622_v36 }
  0x1b   :  { %v99_v53 = vor.u32 %v97_v35, %v96_v43  ;;  %v101_v54 = vrot.slane %v96_v43, 4  ;;  %v111_v55 = vsel %vm781_vm7, %v74_v41, %v110_v52  ;;  %v115_v58 = vld [vmem:[#allocation2 + $0x8] sm:$0x1]  ;;  %201 = vmatpush.bf16.msra.mxu0 %v618_v40 }
  0x1c   :  { %v83_v57 = vsel %vm787_vm8, %v75_v42, %v82_v48  ;;  %112 = vst [vmem:[#allocation2] sm:$0xf] %v111_v55  ;;  %v119_v59 = vsel %vm781_vm7, %v91_v50, %v118_v56  ;;  %v116_v62 = vsel %vm762_vm3, %v84_v49, %v115_v58  ;;  %v122_v63 = vld [vmem:[#allocation2 + $0x14] sm:$0x1]  ;;  %384 = vmatpush.bf16.msra.mxu3 %v630_v45  ;;  %v634_v8 = vld [vmem:[#allocation6 + $0x40] sm:$0xff] }
  0x1d   :  { %477 = vmatpush.bf16.msrb.mxu1 %v637_v39  ;;  %v100_v61 = vsel %vm787_vm8, %v92_v51, %v99_v53  ;;  %114 = vst.msk [vmem:[#allocation2 + $0x4] sm:$0xf] %vm108_vm6, %v83_v57  ;;  %v123_v1 = vsel %vm762_vm3, %v101_v54, %v122_v63  ;;  %v626_v10 = vld [vmem:[#allocation6] sm:$0xff] }
  0x1e   :  { %120 = vst [vmem:[#allocation2 + $0xc] sm:$0xf] %v119_v59 }
  0x1f   :  { %421 = vmatpush.bf16.msrb.mxu0 %v629_v46  ;;  %121 = vst.msk [vmem:[#allocation2 + $0x10] sm:$0xf] %vm108_vm6, %v100_v61 }
  0x20   :  { %117 = vst [vmem:[#allocation2 + $0x8] sm:$0x1] %v116_v62 }
  0x21   :  { %478 = vmatpush.bf16.msrb.mxu1 %v636_v60  ;;  %124 = vst [vmem:[#allocation2 + $0x14] sm:$0x1] %v123_v1 }
  0x23   :  { %422 = vmatpush.bf16.msrb.mxu0 %v628_v0  ;;  %v643_v5 = vld [vmem:[#allocation2] sm:$0xe] }
  0x24   :  { %v639_v6 = vld [vmem:[#allocation2] sm:$0xff]  }
  0x25   :  { %v642_v7 = vld [vmem:[#allocation2] sm:$0xf0]  ;;  %479 = vmatpush.bf16.msrb.mxu1 %v635_v3  ;;  %v157_v9 = vshll.u32 %v639_v6, 16  ;;  %v653_v2 = vld [vmem:[#allocation2 + $0xc] sm:$0xe]  ;;  %v155_v15 = vshrl.u32 %v639_v6, 16 }
  0x26   :  { %545 = vmatmul.msk.bf16.vlgmr.msra.gmra.mxu1 %vm190_vm9, %v639_v6  ;;  %v644_v11 = vor.u32 %v643_v5, %v642_v7  ;;  %v311_v12 = vld [vmem:[#allocation2 + $0xc] sm:$0xff]  }
  0x27   :  { %423 = vmatpush.bf16.msrb.mxu0 %v627_v4  ;;  %v652_v13 = vld [vmem:[#allocation2 + $0xc] sm:$0xf0]  ;;  %v135_v14 = vld [vmem:[#allocation2 + $0x8] sm:$0x1]  ;;  %v159_v16 = vrot.slane %v157_v9, 1  ;;  %v339_v24 = vshrl.u32 %v311_v12, 16 }
  0x28   :  { %v150_v17 = vunpack.c.l.b16 %v135_v14  ;;  %v321_v18 = vld [vmem:[#allocation2 + $0x14] sm:$0x1]  ;;  %v262_v21 = vrot.slane %v644_v11, 1  ;;  %v654_v22 = vor.u32 %v653_v2, %v652_v13  ;;  %v341_v25 = vshll.u32 %v311_v12, 16 }
  0x29   :  { %480 = vmatpush.bf16.msrb.mxu1 %v634_v8  ;;  %v335_v19 = vunpack.c.l.b16 %v321_v18  ;;  %v160_v26 = vor.u32 %v159_v16, %v155_v15 }
  0x2a   :  { %v152_v20 = vpack.c.b16 %v150_v17, %v150_v17  ;;  %v343_v29 = vrot.slane %v341_v25, 1  ;;  %v443_v33 = vrot.slane %v654_v22, 1 }
  0x2b   :  { %424 = vmatpush.bf16.msrb.mxu0 %v626_v10  ;;  %v337_v23 = vpack.c.b16 %v335_v19, %v335_v19 }
  0x2c   :  { %v263_v27 = vrot.slane %v152_v20, 1  ;;  %v162_v28 = vshll.u32 %v152_v20, 16  ;;  %v344_v35 = vor.u32 %v343_v29, %v339_v24 }
  0x2d   :  { %v346_v30 = vshll.u32 %v337_v23, 16  ;;  %v444_v34 = vrot.slane %v337_v23, 1 }
  0x2e   :  { %v264_v31 = vsel %vm261_vm10, %v262_v21, %v263_v27  ;;  %v164_v32 = vrot.slane %v162_v28, 1 }
  0x2f   :  { %562 = vmatmul.msk.bf16.vlgmr.msra.gmra.mxu2 %vm190_vm9, %v264_v31  ;;  %v348_v36 = vrot.slane %v346_v30, 1  ;;  %v445_v39 = vsel %vm261_vm10, %v443_v33, %v444_v34 }
  0x30   :  { %v165_v37 = vsel %vm153_vm11, %v160_v26, %v164_v32 }
  0x31   :  { %528 = vmatmul.msk.bf16.vlgmr.msra.gmra.mxu0 %vm190_vm9, %v165_v37  ;;  %v349_v38 = vsel %vm153_vm11, %v344_v35, %v348_v36 }
  0x32   :  { %579 = vmatmul.msk.bf16.vlgmr.msra.gmra.mxu3 %vm190_vm9, %v349_v38 }
  0x36   :  { %613 = vmatmul.msk.bf16.vlgmr.msrb.gmra.mxu1 %vm190_vm9, %v445_v39 }
  0x41   :  { %596 = vmatmul.msk.bf16.vlgmr.msrb.gmra.mxu0 %vm190_vm9, %v311_v12 }
  0xa3   :  { %v243_v40 = vpop.f32.mrf.mxu1 }
  0xab   :  { %v245_v45 = vpop.f32.mrf.mxu1 }
  0xae   :  { %v203_v41 = vpop.f32.mrf.mxu0 }
  0xaf   :  { %v244_v42 = vadd.f32 %v243_v40, %v203_v41 }
  0xb2   :  { %v301_v43 = vpop.f32.mrf.mxu2 }
  0xb3   :  { %v306_v44 = vadd.f32 %v301_v43, %v244_v42  ;;  %v482_v51 = vpop.f32.mrf.mxu1 }
  0xb5   :  { %308 = vst [vmem:[#allocation8] sm:$0xff] %v306_v44  ;;  %v386_v50 = vpop.f32.mrf.mxu3 }
  0xb6   :  { %v205_v46 = vpop.f32.mrf.mxu0 }
  0xb7   :  { %v246_v47 = vadd.f32 %v245_v45, %v205_v46 }
  0xba   :  { %v303_v48 = vpop.f32.mrf.mxu2 }
  0xbb   :  { %v307_v49 = vadd.f32 %v303_v48, %v246_v47  ;;  %v484_v58 = vpop.f32.mrf.mxu1 }
  0xbd   :  { %309 = vst [vmem:[#allocation8 + $0x8] sm:$0xff] %v307_v49  ;;  %v388_v55 = vpop.f32.mrf.mxu3 }
  0xbe   :  { %v426_v52 = vpop.f32.mrf.mxu0 }
  0xbf   :  { %v427_v53 = vadd.f32 %v426_v52, %v386_v50 }
  0xc1   :  { %v487_v54 = vadd.f32 %v482_v51, %v427_v53 }
  0xc3   :  { %490 = vst [vmem:[#allocation8 + $0x10] sm:$0xff] %v487_v54 }
  0xc6   :  { %v428_v56 = vpop.f32.mrf.mxu0 }
  0xc7   :  { %v429_v57 = vadd.f32 %v428_v56, %v388_v55 }
  0xc9   :  { %v488_v59 = vadd.f32 %v484_v58, %v429_v57 }
  0xcb   :  { %491 = vst [vmem:[#allocation8 + $0x18] sm:$0xff] %v488_v59 }
  0xcc   :  { %504 = dma.vmem_to_hbm [thread:$0]  %s497_s1, 512, %s499_s23, [#allocation5], %s738_s24, %s738_s24, %s739_s25  }
  0xcd   :  { %731 = dma.done.wait [#allocation5], 512  }
  0xce   :  { %732 = vsyncadd [#allocation5], 4294966784 }
  0xcf   :  { %509 = vsyncpa [#allocation4], 1 }
  0xd0   :  { %510 = vsyncpa [#allocation7], 1 }
  0xd1   :  { %511 = vsyncpa [#allocation5], 1 }

</bundles_post_ra>
